<compile_context>
chip_gen: v7x
topology: tpu7x:2x2x1
jax: 0.10.0
libtpu: 0.0.40
codegen_flags: <defaults>
</compile_context>

<pallas_src>
import jax
import jax.numpy as jnp
from jax.experimental import pallas as pl
from jax.experimental.pallas import tpu as pltpu


def _fused_mlp_kernel(x_ref, hw_ref, hb_ref, ow_ref, ob_ref, o_ref, h_ref):
    """One batch tile, one hidden layer per grid step; output layer fused into the last step.

    x_ref : (tile_b, Din)       f32   input tile (resident across the layer axis)
    hw_ref: (Din, Din)          bf16  hidden weight of layer l (streamed over l)
    hb_ref: (1, Din)            f32   hidden bias of layer l (streamed over l)
    ow_ref: (Din, Dout_pad)     bf16  output weight (resident, lane-padded)
    ob_ref: (1, Dout_pad)       f32   output bias (resident, lane-padded)
    o_ref : (tile_b, Dout_pad)  f32   output tile (written on the last layer step only)
    h_ref : (tile_b, Din)       f32   VMEM-resident activation scratch
    """
    l = pl.program_id(1)

    @pl.when(l == 0)
    def _():
        h_ref[...] = x_ref[...].astype(jnp.float32)

    # hidden layer l: h <- relu(h @ W_l + b_l); bf16 MXU inputs, f32 accumulate + epilogue.
    a = h_ref[...].astype(hw_ref.dtype)
    y = jnp.dot(a, hw_ref[...], preferred_element_type=jnp.float32)
    h_ref[...] = jnp.maximum(y + hb_ref[...], 0.0)

    @pl.when(l == pl.num_programs(1) - 1)
    def _():
        a_out = h_ref[...].astype(ow_ref.dtype)
        y_out = jnp.dot(a_out, ow_ref[...], preferred_element_type=jnp.float32)
        o_ref[...] = (y_out + ob_ref[...]).astype(o_ref.dtype)


def mlp_fused_forward(x, hidden_w, hidden_b, out_w, out_b, *, tile_b=None):
    """x: (B, Din) f32; hidden_w: (L, Din, Din) bf16; hidden_b: (L, 1, Din) f32;
    out_w: (Din, Dout) bf16; out_b: (Dout,) f32  ->  (B, Dout) f32."""
    B, Din = x.shape
    L = hidden_w.shape[0]
    Dout = out_w.shape[1]

    # Pad output feature dim to a lane-dense multiple of 128 (unmasked vector stores).
    dout_pad = max(128, pl.cdiv(Dout, 128) * 128)
    if dout_pad != Dout:
        out_w = jnp.pad(out_w, ((0, 0), (0, dout_pad - Dout)))
        out_b = jnp.pad(out_b, (0, dout_pad - Dout))
    out_b2 = out_b.reshape(1, dout_pad).astype(jnp.float32)

    # Batch tiling: 128-row tiles when batch is large; pad batch to a tile multiple
    # (never a whole-batch fallback that could blow VMEM on large batches).
    if tile_b is None:
        tile_b = 128 if B >= 128 else pl.cdiv(B, 8) * 8
    b_pad = pl.cdiv(B, tile_b) * tile_b
    if b_pad != B:
        x = jnp.pad(x, ((0, b_pad - B), (0, 0)))

    grid = (b_pad // tile_b, L)

    # Rough VMEM budget; raise the scoped limit only when the default (~32 MiB) is tight.
    w_itemsize = jnp.dtype(hidden_w.dtype).itemsize
    est = (2 * Din * Din * w_itemsize            # double-buffered hidden weight
           + 2 * tile_b * Din * 4                # x tile (double-buffered)
           + 2 * tile_b * dout_pad * 4           # output tile (double-buffered)
           + tile_b * Din * 4                    # activation scratch
           + Din * dout_pad * w_itemsize         # resident output weight
           + 4 * (Din * 4 + dout_pad * 4))       # biases (double-buffered)
    vmem_limit = None
    if est > (30 << 20):
        vmem_limit = min(int(est * 1.25), 96 << 20)

    out = pl.pallas_call(
        _fused_mlp_kernel,
        out_shape=jax.ShapeDtypeStruct((b_pad, dout_pad), jnp.float32),
        grid_spec=pltpu.PrefetchScalarGridSpec(
            num_scalar_prefetch=0,
            grid=grid,
            in_specs=[
                pl.BlockSpec((tile_b, Din), lambda i, l: (i, 0)),          # x (resident over l)
                pl.BlockSpec((None, Din, Din), lambda i, l: (l, 0, 0)),    # streamed hidden W_l
                pl.BlockSpec((None, 1, Din), lambda i, l: (l, 0, 0)),      # streamed hidden b_l
                pl.BlockSpec((Din, dout_pad), lambda i, l: (0, 0)),        # output W (resident)
                pl.BlockSpec((1, dout_pad), lambda i, l: (0, 0)),          # output b (resident)
            ],
            out_specs=pl.BlockSpec((tile_b, dout_pad), lambda i, l: (i, 0)),
            scratch_shapes=[pltpu.VMEM((tile_b, Din), jnp.float32)],
        ),
        compiler_params=pltpu.CompilerParams(
            dimension_semantics=("parallel", "arbitrary"),
            vmem_limit_bytes=vmem_limit,
        ),
    )(x, hidden_w, hidden_b, out_w, out_b2)

    return out[:B, :Dout]


class SimpleNNModelPallas:
    """JAX/Pallas port of SimpleNNModel: layer_number x (Linear+ReLU) then Linear(Din -> Dout)."""

    def __init__(self, input_dim: int, output_dim: int, layer_number: int, key):
        assert layer_number >= 1, "fused kernel expects at least one hidden layer"
        self.input_dim = input_dim
        self.output_dim = output_dim
        self.layer_number = layer_number

        scale = 1.0 / float(input_dim) ** 0.5
        keys = jax.random.split(key, 2 * layer_number + 2)

        hw, hb = [], []
        for l in range(layer_number):
            hw.append(jax.random.uniform(keys[2 * l], (input_dim, input_dim),
                                         jnp.float32, minval=-scale, maxval=scale))
            hb.append(jax.random.uniform(keys[2 * l + 1], (input_dim,),
                                         jnp.float32, minval=-scale, maxval=scale))
        # weights stored (in, out) == PyTorch weight.T, bf16 for MXU / halved HBM traffic
        self.hidden_w = jnp.stack(hw).astype(jnp.bfloat16)                       # (L, Din, Din)
        self.hidden_b = jnp.stack(hb).reshape(layer_number, 1, input_dim)        # (L, 1, Din) f32
        self.out_w = jax.random.uniform(keys[-2], (input_dim, output_dim),
                                        jnp.float32, minval=-scale, maxval=scale
                                        ).astype(jnp.bfloat16)                   # (Din, Dout)
        self.out_b = jax.random.uniform(keys[-1], (output_dim,),
                                        jnp.float32, minval=-scale, maxval=scale)

    def __call__(self, x):
        return mlp_fused_forward(x, self.hidden_w, self.hidden_b, self.out_w, self.out_b)

    def reference(self, x):
        """Pure-JAX reference doing the same arithmetic (bf16 matmul inputs, f32 accumulate)."""
        h = x.astype(jnp.float32)
        for l in range(self.layer_number):
            y = jnp.dot(h.astype(jnp.bfloat16), self.hidden_w[l],
                        preferred_element_type=jnp.float32)
            h = jnp.maximum(y + self.hidden_b[l], 0.0)
        y = jnp.dot(h.astype(jnp.bfloat16), self.out_w, preferred_element_type=jnp.float32)
        return y + self.out_b


if __name__ == "__main__":
    # Small shapes consistent with the module (input_dim scaled down from 2151).
    batch, input_dim, output_dim, layer_number = 8, 256, 1, 2

    key = jax.random.PRNGKey(0)
    key, kx = jax.random.split(key)
    x = jax.random.normal(kx, (batch, input_dim), jnp.float32)

    model = SimpleNNModelPallas(input_dim, output_dim, layer_number, key)

    out = jax.block_until_ready(model(x))
    ref = model.reference(x)

    assert out.shape == (batch, output_dim)
    assert jnp.allclose(out, ref, atol=2e-3, rtol=2e-3), "mismatch vs. pure-JAX reference"

    print("KERNEL_OK")
</pallas_src>

<mosaic_0001>
module attributes {stable_mosaic.version = 11 : i64} {
  func.func @_fused_mlp_kernel(%arg0: i32, %arg1: i32, %arg2: memref<8x256xf32, #tpu.memory_space<vmem>>, %arg3: memref<1x256x256xbf16, #tpu.memory_space<vmem>>, %arg4: memref<1x1x256xf32, #tpu.memory_space<vmem>>, %arg5: memref<256x128xbf16, #tpu.memory_space<vmem>>, %arg6: memref<1x128xf32, #tpu.memory_space<vmem>>, %arg7: memref<8x128xf32, #tpu.memory_space<vmem>>, %arg8: memref<8x256xf32, #tpu.memory_space<vmem>>) attributes {dimension_semantics = [#tpu.dimension_semantics<parallel>, #tpu.dimension_semantics<arbitrary>], iteration_bounds = array<i64: 1, 2>, scalar_prefetch = 0 : i64, scratch_operands = 1 : i64, tpu.core_type = #tpu.core_type<tc>, window_params = [{transform_indices = @transform_0, window_bounds = array<i64: 8, 256>}, {transform_indices = @transform_1, window_bounds = array<i64: 1, 256, 256>}, {transform_indices = @transform_2, window_bounds = array<i64: 1, 1, 256>}, {pipeline_mode = #tpu.pipeline_mode<synchronous>, transform_indices = @transform_3, window_bounds = array<i64: 256, 128>}, {pipeline_mode = #tpu.pipeline_mode<synchronous>, transform_indices = @transform_4, window_bounds = array<i64: 1, 128>}, {transform_indices = @transform_5, window_bounds = array<i64: 8, 128>}]} {
    %c0_i32 = arith.constant 0 : i32
    %0 = arith.cmpi eq, %arg1, %c0_i32 : i32
    %1 = arith.extui %0 : i1 to i32
    %c0_i32_0 = arith.constant 0 : i32
    %2 = arith.cmpi ne, %1, %c0_i32_0 : i32
    scf.if %2 {
      %c0_12 = arith.constant 0 : index
      %c0_13 = arith.constant 0 : index
      %18 = vector.load %arg2[%c0_12, %c0_13] : memref<8x256xf32, #tpu.memory_space<vmem>>, vector<8x256xf32>
      %c0_14 = arith.constant 0 : index
      %c0_15 = arith.constant 0 : index
      %19 = vector.load %arg8[%c0_14, %c0_15] : memref<8x256xf32, #tpu.memory_space<vmem>>, vector<8x256xf32>
      tpu.vector_store %arg8[%c0_14, %c0_15], %18 {strides = array<i32>} : memref<8x256xf32, #tpu.memory_space<vmem>>, vector<8x256xf32>,
    } else {
    }
    %c0 = arith.constant 0 : index
    %c0_1 = arith.constant 0 : index
    %3 = vector.load %arg8[%c0, %c0_1] : memref<8x256xf32, #tpu.memory_space<vmem>>, vector<8x256xf32>
    %4 = arith.truncf %3 : vector<8x256xf32> to vector<8x256xbf16>
    %c0_2 = arith.constant 0 : index
    %c0_3 = arith.constant 0 : index
    %c0_4 = arith.constant 0 : index
    %5 = vector.load %arg3[%c0_2, %c0_3, %c0_4] : memref<1x256x256xbf16, #tpu.memory_space<vmem>>, vector<1x256x256xbf16>
    %6 = vector.shape_cast %5 : vector<1x256x256xbf16> to vector<256x256xbf16>
    %cst = arith.constant dense<0.000000e+00> : vector<8x256xf32>
    %7 = tpu.matmul %4, %6, %cst {dimension_numbers = #tpu.dot_dimension_numbers<[1], [0], [0], [1], [0, 0, 1, 1], [], []>} : vector<8x256xbf16>, vector<256x256xbf16>, vector<8x256xf32> -> vector<8x256xf32>
    %c0_5 = arith.constant 0 : index
    %c0_6 = arith.constant 0 : index
    %c0_7 = arith.constant 0 : index
    %8 = vector.load %arg4[%c0_5, %c0_6, %c0_7] : memref<1x1x256xf32, #tpu.memory_space<vmem>>, vector<1x1x256xf32>
    %9 = vector.shape_cast %8 : vector<1x1x256xf32> to vector<1x256xf32>
    %10 = vector.broadcast %9 : vector<1x256xf32> to vector<8x256xf32>
    %11 = arith.addf %7, %10 : vector<8x256xf32>
    %cst_8 = arith.constant 0.000000e+00 : f32
    %12 = vector.broadcast %cst_8 : f32 to vector<8x256xf32>
    %13 = arith.maximumf %11, %12 : vector<8x256xf32>
    %c0_9 = arith.constant 0 : index
    %c0_10 = arith.constant 0 : index
    %14 = vector.load %arg8[%c0_9, %c0_10] : memref<8x256xf32, #tpu.memory_space<vmem>>, vector<8x256xf32>
    tpu.vector_store %arg8[%c0_9, %c0_10], %13 {strides = array<i32>} : memref<8x256xf32, #tpu.memory_space<vmem>>, vector<8x256xf32>,
    %c1_i32 = arith.constant 1 : i32
    %15 = arith.cmpi eq, %arg1, %c1_i32 : i32
    %16 = arith.extui %15 : i1 to i32
    %c0_i32_11 = arith.constant 0 : i32
    %17 = arith.cmpi ne, %16, %c0_i32_11 : i32
    scf.if %17 {
      %c0_12 = arith.constant 0 : index
      %c0_13 = arith.constant 0 : index
      %18 = vector.load %arg8[%c0_12, %c0_13] : memref<8x256xf32, #tpu.memory_space<vmem>>, vector<8x256xf32>
      %19 = arith.truncf %18 : vector<8x256xf32> to vector<8x256xbf16>
      %c0_14 = arith.constant 0 : index
      %c0_15 = arith.constant 0 : index
      %20 = vector.load %arg5[%c0_14, %c0_15] : memref<256x128xbf16, #tpu.memory_space<vmem>>, vector<256x128xbf16>
      %cst_16 = arith.constant dense<0.000000e+00> : vector<8x128xf32>
      %21 = tpu.matmul %19, %20, %cst_16 {dimension_numbers = #tpu.dot_dimension_numbers<[1], [0], [0], [1], [0, 0, 1, 1], [], []>} : vector<8x256xbf16>, vector<256x128xbf16>, vector<8x128xf32> -> vector<8x128xf32>
      %c0_17 = arith.constant 0 : index
      %c0_18 = arith.constant 0 : index
      %22 = vector.load %arg6[%c0_17, %c0_18] : memref<1x128xf32, #tpu.memory_space<vmem>>, vector<1x128xf32>
      %23 = vector.broadcast %22 : vector<1x128xf32> to vector<8x128xf32>
      %24 = arith.addf %21, %23 : vector<8x128xf32>
      %c0_19 = arith.constant 0 : index
      %c0_20 = arith.constant 0 : index
      %25 = vector.load %arg7[%c0_19, %c0_20] : memref<8x128xf32, #tpu.memory_space<vmem>>, vector<8x128xf32>
      tpu.vector_store %arg7[%c0_19, %c0_20], %24 {strides = array<i32>} : memref<8x128xf32, #tpu.memory_space<vmem>>, vector<8x128xf32>,
    } else {
    }
    return
  }
  func.func @transform_0(%arg0: i32, %arg1: i32) -> (i32, i32) {
    %c0_i32 = arith.constant 0 : i32
    %c0_i32_0 = arith.constant 0 : i32
    return %arg0, %c0_i32 : i32, i32
  }
  func.func @transform_1(%arg0: i32, %arg1: i32) -> (i32, i32, i32) {
    %c0_i32 = arith.constant 0 : i32
    %c0_i32_0 = arith.constant 0 : i32
    %c0_i32_1 = arith.constant 0 : i32
    return %arg1, %c0_i32, %c0_i32_0 : i32, i32, i32
  }
  func.func @transform_2(%arg0: i32, %arg1: i32) -> (i32, i32, i32) {
    %c0_i32 = arith.constant 0 : i32
    %c0_i32_0 = arith.constant 0 : i32
    %c0_i32_1 = arith.constant 0 : i32
    return %arg1, %c0_i32, %c0_i32_0 : i32, i32, i32
  }
  func.func @transform_3(%arg0: i32, %arg1: i32) -> (i32, i32) {
    %c0_i32 = arith.constant 0 : i32
    %c0_i32_0 = arith.constant 0 : i32
    %c0_i32_1 = arith.constant 0 : i32
    return %c0_i32, %c0_i32_0 : i32, i32
  }
  func.func @transform_4(%arg0: i32, %arg1: i32) -> (i32, i32) {
    %c0_i32 = arith.constant 0 : i32
    %c0_i32_0 = arith.constant 0 : i32
    %c0_i32_1 = arith.constant 0 : i32
    return %c0_i32, %c0_i32_0 : i32, i32
  }
  func.func @transform_5(%arg0: i32, %arg1: i32) -> (i32, i32) {
    %c0_i32 = arith.constant 0 : i32
    %c0_i32_0 = arith.constant 0 : i32
    return %arg0, %c0_i32 : i32, i32
  }
}

</mosaic_0001>

<bundles_post_ra>
// kernel: tpu_custom_call.1
= control target key start
LH: loop header
LB: loop body
LE: loop exit
PB: predicated region body
PF: predicated region fallthrough
CT: control target
= control target key end

     0   :  { %10 = vsyncpa [#allocation4], 0  ;;  %s1561_s0 = inlined_call_operand.hbm [shape: f32[8,256], index: 0, kind: input, shape index: {}]   ;;  %s1562_s1 = inlined_call_operand.hbm [shape: bf16[2,256,256], index: 1, kind: input, shape index: {}]   ;;  %s1563_s2 = inlined_call_operand.vmem [shape: f32[2,1,256], index: 2, kind: input, shape index: {}]   ;;  %s1564_s3 = inlined_call_operand.hbm [shape: bf16[256,128], index: 3, kind: input, shape index: {}]   ;;  %s1565_s4 = inlined_call_operand.vmem [shape: f32[1,128], index: 4, kind: input, shape index: {}]   ;;  %s1566_s5 = inlined_call_operand.hbm [shape: f32[8,128], index: 5, kind: output, shape index: {}]  }
   0x1   :  { %11 = vsyncpa [#allocation7], 0 }
   0x2   :  { %13 = vsyncpa [#allocation7 + $0x1], 0 }
   0x3   :  { %14 = vsyncpa [#allocation5], 0  ;;  %s1307_s18 = smov 0   ;;  %s1309_s19 = smov 0  }
   0x4   :  { %s1311_s20 = smov 0   ;;  %s1313_s21 = smov 0  }
   0x5   :  { %s1315_s22 = smov 0   ;;  %s1317_s23 = smov 0  }
   0x6 LB: > { %s1336_s24 = sadd.s32 4294967295, %s1267_s23   ;;  %p72_p0 = scmp.ne.s32.totalorder %s1255_s20, %s1251_s19  ;;  %s1267_s23 = sphi %s1317_s23, %s20_s23   ;;  %s1263_s22 = sphi %s1315_s22, %s1586_s22   ;;  %s1259_s21 = sphi %s1313_s21, %s1585_s21   ;;  %s1255_s20 = sphi %s1311_s20, %s1584_s20   ;;  %s1251_s19 = sphi %s1309_s19, %s1583_s19   ;;  %s1247_s18 = sphi %s1307_s18, %s1582_s18  }
   0x7   : > { %p73_p1 = scmp.eq.s32.totalorder %s1267_s23, 0  ;;  %p78_p2 = scmp.ne.s32.totalorder %s1251_s19, %s1247_s18 }
   0x8   : > { %p1567_p3 = scmp.eq.s32.totalorder %s1336_s24, 0  ;;  %p852_p4 = scmp.ge.s32.totalorder %s1267_s23, 1 }
   0x9   : > { %p74_p5 = por %p73_p1, %p72_p0  ;;  %p183_p6 = scmp.lt.s32.totalorder %s1267_s23, 3 }
   0xa   : > { %p1347_p7 = por %p1567_p3, %p78_p2  ;;  %s1269_s27 = smov [#allocation8]  }
   0xb   : > { %p1351_p8 = pnand %p852_p4, %p183_p6  ;;  %s209_s28 = sshll.u32 %s1269_s27, 4  ;;  %s210_s28 = int_to_ptr.vmem [resolvable:$true] %s209_s28 }
   0xc   : > { %s1571_s25 = scalar_select %p1347_p7, 1, 0 }
   0xd   : > { %s1572_s26 = scalar_select %p1351_p8, 1, 0 }
   0xe   : > { %p956_p9 = pneg %p1351_p8  ;;  %p969_p11 = scmp.lt.s32.totalorder %s1267_s23, 2 }
   0xf   : > { %s1093_s8 = scalar_lea.hbm %s1564_s3, 2048 }
  0x10   : > { %p1359_p10 = pnand %p956_p9, %p1567_p3  ;;  %p1364_p12 = pnand %p969_p11, %p74_p5 }
  0x11   : > { %p1094_p13 = scmp.ne.s32.totalorder %s1564_s3, %s1093_s8  ;;  %p1100_p4 = scmp.lt.u32.totalorder %s1093_s8, %s1564_s3 }
  0x12   : > { %s1574_s30 = scalar_select %p1364_p12, 1, 0 }
  0x13   : > { %p1095_p0 = pneg %p1359_p10 }
  0x15   : > { %p1096_p1 = pnand %p1095_p0, %p1094_p13 }
  0x17   : > { %p1097_p2 = pneg %p1096_p1 }
  0x19   : > { %p1102_p5 = pnand %p1100_p4, %p1097_p2 }
  0x1b   : > { %1105 = shalt.err (!%p1102_p5)
}
  0x1c   : > { %s1106_s13 = scalar_lea.vmem %s210_s28, 2048  ;;  %p1114_p3 = scmp.lt.s32.totalorder %s210_s28, %s210_s28 }
  0x1d   : > { %p1107_p6 = scmp.ne.s32.totalorder %s210_s28, %s1106_s13  ;;  %p1115_p7 = scmp.lt.s32.totalorder %s1106_s13, %s1106_s13 }
  0x1f   : > { %p1109_p9 = pnand %p1107_p6, %p1095_p0  ;;  %p1116_p8 = por %p1115_p7, %p1114_p3 }
  0x21   : > { %p1110_p11 = pneg %p1109_p9 }
  0x23   : > { %p1117_p12 = pnand %p1116_p8, %p1110_p11 }
  0x25   : > { %1120 = shalt.err (!%p1117_p12)
}
  0x26   : > { %s1270_s14 = smov 64   ;;  %s1271_s15 = smov 4  }
  0x27   : > { %962 = dma.hbm_to_vmem [thread:$0]  (!%p1359_p10), %s1564_s3, 2048, %s210_s28, [#allocation7], %s1270_s14, %s1270_s14, %s1271_s15  }
  0x28   : > { %s1272_s18 = smov [#allocation3]   ;;  %s1121_s8 = scalar_lea.hbm %s1561_s0, 256 }
  0x29   : > { %s199_s27 = sshll.u32 %s1272_s18, 4  ;;  %p1122_p3 = scmp.ne.s32.totalorder %s1561_s0, %s1121_s8  ;;  %s200_s27 = int_to_ptr.vmem [resolvable:$true] %s199_s27 }
  0x2a   : > { %p1128_p12 = scmp.lt.u32.totalorder %s1121_s8, %s1561_s0 }
  0x2b   : > { %p1124_p7 = pnand %p1122_p3, %p1095_p0 }
  0x2d   : > { %p1125_p8 = pneg %p1124_p7 }
  0x2f   : > { %p1130_p13 = pnand %p1128_p12, %p1125_p8 }
  0x31   : > { %1133 = shalt.err (!%p1130_p13)
}
  0x32   : > { %s1134_s28 = scalar_lea.vmem %s200_s27, 256  ;;  %p1142_p5 = scmp.lt.s32.totalorder %s200_s27, %s200_s27 }
  0x33   : > { %p1135_p1 = scmp.ne.s32.totalorder %s200_s27, %s1134_s28  ;;  %p1143_p6 = scmp.lt.s32.totalorder %s1134_s28, %s1134_s28 }
  0x35   : > { %p1137_p2 = pnand %p1135_p1, %p1095_p0  ;;  %p1144_p9 = por %p1143_p6, %p1142_p5 }
  0x37   : > { %p1138_p4 = pneg %p1137_p2 }
  0x39   : > { %p1145_p11 = pnand %p1144_p9, %p1138_p4 }
  0x3b   : > { %1148 = shalt.err (!%p1145_p11)
}
  0x3c   : > { %959 = dma.hbm_to_vmem [thread:$0]  (!%p1359_p10), %s1561_s0, 256, %s200_s27, [#allocation4]  }
  0x3d   : > { %s29_s15 = sadd.s32 1, %s1263_s22  ;;  %s65_s16 = sadd.s32 1, %s1255_s20 }
  0x3e   : > { %p30_p0 = scmp.ge.s32.totalorder %s29_s15, 2  ;;  %s226_s17 = sand.u32 1, %s1267_s23  }
  0x3f   : > { %s228_s18 = sand.u32 1, %s1255_s20   ;;  %s919_s6 = sshll.u32 %s1263_s22, 12 }
  0x40   : > { %s1588_s15 = smov (%p30_p0, %s29_s15), 0  ;;  %s856_s29 = sshll.u32 %s228_s18, 8 }
  0x41   : > { %s62_s7 = ssub.s32 %s1263_s22, %s1588_s15  ;;  %s1422_s10 = scalar_lea.hbm %s1562_s1, %s919_s6 }
  0x42   : > { %p63_p3 = scmp.eq.s32.totalorder %s62_s7, 0  ;;  %s230_s27 = scalar_lea.vmem [#allocation6], %s856_s29 }
  0x43   : > { %s237_s11 = sshll.u32 %s230_s27, 4  ;;  %s1429_s28 = scalar_lea.sflag [#allocation7], %s226_s17  ;;  %s1427_s11 = int_to_ptr.vmem [resolvable:$true] %s237_s11 }
  0x44   : > { %s1425_s12 = scalar_select %p63_p3, %s1255_s20, %s65_s16  }
  0x45   : > { %s1149_s13 = scalar_lea.hbm %s1422_s10, 4096  ;;  %p1575_p7 = scmp.ne.s32.totalorder %s1574_s30, 0 }
  0x46   : > { %p1150_p10 = scmp.ne.s32.totalorder %s1422_s10, %s1149_s13  ;;  %s1154_s6 = scalar_lea.hbm %s1562_s1, 8192 }
  0x47   : > { %p1151_p8 = pneg %p1575_p7  ;;  %p1155_p1 = scmp.lt.u32.totalorder %s1422_s10, %s1562_s1 }
  0x48   : > { %p1156_p2 = scmp.lt.u32.totalorder %s1154_s6, %s1149_s13  ;;  %p1158_p5 = scmp.lt.u32.totalorder %s1149_s13, %s1422_s10 }
  0x49   : > { %p1152_p12 = pnand %p1151_p8, %p1150_p10 }
  0x4a   : > { %p1157_p4 = por %p1156_p2, %p1155_p1 }
  0x4b   : > { %p1153_p13 = pneg %p1152_p12 }
  0x4c   : > { %p1159_p6 = por %p1158_p5, %p1157_p4 }
  0x4e   : > { %p1160_p9 = pnand %p1159_p6, %p1153_p13 }
  0x50   : > { %1163 = shalt.err (!%p1160_p9)
}
  0x51   : > { %s1164_s16 = scalar_lea.vmem %s1427_s11, 4096  ;;  %s1273_s17 = smov [#allocation6]  }
  0x52   : > { %p1165_p11 = scmp.ne.s32.totalorder %s1427_s11, %s1164_s16  ;;  %s1169_s8 = sshll.u32 %s1273_s17, 4  ;;  %s1170_s8 = int_to_ptr.vmem [resolvable:$false] %s1169_s8 }
  0x53   : > { %s1171_s9 = scalar_lea.vmem %s1170_s8, 8192  ;;  %p1172_p10 = scmp.lt.s32.totalorder %s1427_s11, %s1170_s8 }
  0x54   : > { %p1167_p0 = pnand %p1165_p11, %p1151_p8  ;;  %p1173_p12 = scmp.lt.s32.totalorder %s1171_s9, %s1164_s16 }
  0x56   : > { %p1168_p3 = pneg %p1167_p0  ;;  %p1174_p1 = por %p1173_p12, %p1172_p10 }
  0x58   : > { %p1175_p2 = pnand %p1174_p1, %p1168_p3 }
  0x5a   : > { %1178 = shalt.err (!%p1175_p2)
}
  0x5b   : > { %s1274_s27 = smov 128   ;;  %s1275_s13 = smov 8  }
  0x5c   : > { %966 = dma.hbm_to_vmem [thread:$0]  (!%p1575_p7), %s1422_s10, 4096, %s1427_s11, %s1429_s28, %s1274_s27, %s1274_s27, %s1275_s13  }
  0x5d   : > { %p1576_p8 = scmp.ne.s32.totalorder %s1572_s26, 0 }
  0x5e   : > { %p1577_p13 = scmp.eq.s32.totalorder (!%p1576_p8), %s1336_s24, 0 }
  0x5f   : > { %256 = sbr.rel (%p1576_p8) target bundleno = 657 (0x291), region = 40 }
  0x66   : > { %1230 = dma.done.wait (%p1577_p13), [#allocation4], 256   ;;  %p1578_p4 = pmov %p1577_p13 }
  0x67   : > { %s262_s14 = sand.u32 1, %s1336_s24   ;;  %s264_s18 = sand.u32 1, %s1251_s19  }
  0x68   : > { %1232 = vsyncadd (%p1578_p4), [#allocation4], 4294967040  ;;  %s861_s6 = sshll.u32 %s264_s18, 8  ;;  %s263_s29 = scalar_lea.sflag [#allocation7], %s262_s14 }
  0x69   : > { %s1465_s7 = scalar_lea.vmem [#allocation6], %s861_s6  ;;  %p1579_p5 = scmp.ne.s32.totalorder %s1571_s25, 0 }
  0x6b   : > { %1234 = dma.done.wait (%p1579_p5), %s263_s29, 4096  }
  0x6c   : > { %1236 = vsyncadd (%p1579_p5), %s263_s29, 4294963200  ;;  %p1580_p7 = pmov %p1578_p4 }
  0x6d   : > { %p1581_p6 = pmov %p1578_p4 }
  0x6e   : > { %1238 = dma.done.wait (%p1580_p7), [#allocation7], 2048  }
  0x6f   : > { %1240 = vsyncadd (%p1581_p6), [#allocation7], 4294965248  ;;  %p296_p9 = scmp.lt.s32.totalorder %s1259_s21, 1  ;;  %p864_p11 = scmp.ne.s32.totalorder %s1259_s21, 0 }
  0x70   : > { %v305_v0 = vld [vmem:[#allocation3] sm:$0xff] (!%p864_p11)  ;;  %v306_v1 = vld [vmem:[#allocation3 + $0x8] sm:$0xff] (!%p864_p11) }
  0x71   : > { %s297_s26 = scalar_select %p296_p9, %s1259_s21, 1 }
  0x72   : > { %304 = sbr.rel (%p864_p11) target bundleno = 121 (0x79), region = 56  ;;  %307 = vst [vmem:[#allocation2] sm:$0xff] (!%p864_p11), %v305_v0  ;;  %308 = vst [vmem:[#allocation2 + $0x8] sm:$0xff] (!%p864_p11), %v306_v1 }
  0x73   : > { %s863_s30 = sshll.u32 %s297_s26, 1 }
  0x74   : > { %s1480_s28 = scalar_lea.vmem %s1563_s2, %s863_s30 }
  0x79 PF: > { %v1029_v2 = vld [vmem:[%s1465_s7 + $0x4] ss:$8 sps:$4 sm:$0xff]   ;;  %v1031_v3 = vld [vmem:[%s1465_s7] ss:$8 sps:$4 sm:$0xff]   ;;  %v1032_v4 = vld [vmem:[%s1465_s7 + $0x14] ss:$8 sps:$4 sm:$0xff]   ;;  %v347_v38 = vlaneseq }
  0x7a   : > { %517 = vmatprep.subr.bf16.mxu0 %v1029_v2  ;;  %v1034_v5 = vld [vmem:[%s1465_s7 + $0x10] ss:$8 sps:$4 sm:$0xff]   ;;  %v1035_v6 = vld [vmem:[%s1465_s7 + $0x24] ss:$8 sps:$4 sm:$0xff]   ;;  %v1037_v7 = vld [vmem:[%s1465_s7 + $0x20] ss:$8 sps:$4 sm:$0xff]  }
  0x7b   : > { %518 = vmatpush1.bf16.msra.mxu0 %v1031_v3  ;;  %v1038_v8 = vld [vmem:[%s1465_s7 + $0x34] ss:$8 sps:$4 sm:$0xff]   ;;  %v1040_v9 = vld [vmem:[%s1465_s7 + $0x30] ss:$8 sps:$4 sm:$0xff]   ;;  %v1041_v10 = vld [vmem:[%s1465_s7 + $0x44] ss:$8 sps:$4 sm:$0xff]  }
  0x7c   : > { %519 = vmatprep.subr.bf16.mxu0 %v1032_v4  ;;  %v1043_v11 = vld [vmem:[%s1465_s7 + $0x40] ss:$8 sps:$4 sm:$0xff]   ;;  %v1044_v12 = vld [vmem:[%s1465_s7 + $0x54] ss:$8 sps:$4 sm:$0xff]   ;;  %v1046_v13 = vld [vmem:[%s1465_s7 + $0x50] ss:$8 sps:$4 sm:$0xff]  }
  0x7d   : > { %v1047_v14 = vld [vmem:[%s1465_s7 + $0x64] ss:$8 sps:$4 sm:$0xff]   ;;  %v1049_v17 = vld [vmem:[%s1465_s7 + $0x60] ss:$8 sps:$4 sm:$0xff]   ;;  %v1050_v18 = vld [vmem:[%s1465_s7 + $0x74] ss:$8 sps:$4 sm:$0xff]  }
  0x7e   : > { %v310_v15 = vld [vmem:[#allocation2 + $0x8] sm:$0xff]  ;;  %v1052_v19 = vld [vmem:[%s1465_s7 + $0x70] ss:$8 sps:$4 sm:$0xff]   ;;  %v1056_v22 = vld [vmem:[%s1465_s7 + $0x94] ss:$8 sps:$4 sm:$0xff]   ;;  %v348_v39 = vshrl.u32 %v347_v38, 7 }
  0x7f   : > { %520 = vmatpush1.bf16.msra.mxu0 %v1034_v5  ;;  %v312_v16 = vpack.c.bf16 %v310_v15, %v310_v15  ;;  %v1053_v20 = vld [vmem:[%s1465_s7 + $0x84] ss:$8 sps:$4 sm:$0xff]   ;;  %v1055_v21 = vld [vmem:[%s1465_s7 + $0x80] ss:$8 sps:$4 sm:$0xff]   ;;  %v1058_v23 = vld [vmem:[%s1465_s7 + $0x90] ss:$8 sps:$4 sm:$0xff]  }
  0x80   : > { %521 = vmatprep.subr.bf16.mxu0 %v1035_v6  ;;  %v1059_v24 = vld [vmem:[%s1465_s7 + $0xa4] ss:$8 sps:$4 sm:$0xff]   ;;  %v1061_v25 = vld [vmem:[%s1465_s7 + $0xa0] ss:$8 sps:$4 sm:$0xff]   ;;  %v1062_v26 = vld [vmem:[%s1465_s7 + $0xb4] ss:$8 sps:$4 sm:$0xff]  }
  0x81   : > { %549 = vmatprep.mubr.bf16.mxu0 %v312_v16  ;;  %v1064_v27 = vld [vmem:[%s1465_s7 + $0xb0] ss:$8 sps:$4 sm:$0xff]   ;;  %v1065_v28 = vld [vmem:[%s1465_s7 + $0xc4] ss:$8 sps:$4 sm:$0xff]   ;;  %v1067_v29 = vld [vmem:[%s1465_s7 + $0xc0] ss:$8 sps:$4 sm:$0xff]  }
  0x82   : > { %v1068_v30 = vld [vmem:[%s1465_s7 + $0xd4] ss:$8 sps:$4 sm:$0xff]   ;;  %v1070_v31 = vld [vmem:[%s1465_s7 + $0xd0] ss:$8 sps:$4 sm:$0xff]   ;;  %v1071_v32 = vld [vmem:[%s1465_s7 + $0xe4] ss:$8 sps:$4 sm:$0xff]  }
  0x83   : > { %522 = vmatpush1.bf16.msra.mxu0 %v1037_v7  ;;  %v1073_v33 = vld [vmem:[%s1465_s7 + $0xe0] ss:$8 sps:$4 sm:$0xff]   ;;  %v1074_v34 = vld [vmem:[%s1465_s7 + $0xf4] ss:$8 sps:$4 sm:$0xff]   ;;  %v1076_v35 = vld [vmem:[%s1465_s7 + $0xf0] ss:$8 sps:$4 sm:$0xff]  }
  0x84   : > { %523 = vmatprep.subr.bf16.mxu0 %v1038_v8  ;;  %v309_v36 = vld [vmem:[#allocation2] sm:$0xff]  ;;  %v349_v40 = vsub.s32 0, %v348_v39  ;;  %v353_v42 = vsub.s32 1, %v348_v39  ;;  %p897_p0 = scmp.ne.s32.totalorder %s1259_s21, 1 }
  0x85   : > { %v311_v37 = vpack.c.bf16 %v309_v36, %v309_v36  ;;  %v345_v41 = vld [vmem:[%s1480_s28] sm:$0x3]  ;;  %v1079_v55 = vld [vmem:[#allocation8 + $0x48] sm:$0xff] (!%p897_p0)   ;;  %v1081_v57 = vld [vmem:[#allocation8 + $0x50] sm:$0xff] (!%p897_p0)  }
  0x86   : > { %v350_v43 = vrot.slane %v345_v41, %v349_v40  ;;  %v354_v44 = vrot.slane %v345_v41, %v353_v42  ;;  %v1077_v53 = vld [vmem:[#allocation8 + $0x40] sm:$0xff] (!%p897_p0)   ;;  %v1080_v56 = vld [vmem:[#allocation8 + $0x8] sm:$0xff] (!%p897_p0)   ;;  %v1082_v58 = vld [vmem:[#allocation8 + $0x10] sm:$0xff] (!%p897_p0)  }
  0x87   : > { %524 = vmatpush1.bf16.msra.mxu0 %v1040_v9  ;;  %v1078_v54 = vld [vmem:[#allocation8] sm:$0xff] (!%p897_p0)   ;;  %v1083_v59 = vld [vmem:[#allocation8 + $0x58] sm:$0xff] (!%p897_p0)   ;;  %v1087_v63 = vld [vmem:[#allocation8 + $0x68] sm:$0xff] (!%p897_p0)  }
  0x88   : > { %525 = vmatprep.subr.bf16.mxu0 %v1041_v10  ;;  %v1084_v60 = vld [vmem:[#allocation8 + $0x18] sm:$0xff] (!%p897_p0)   ;;  %v1085_v61 = vld [vmem:[#allocation8 + $0x60] sm:$0xff] (!%p897_p0)   ;;  %v1088_v2 = vld [vmem:[#allocation8 + $0x28] sm:$0xff] (!%p897_p0)  }
  0x89   : > { %v1086_v62 = vld [vmem:[#allocation8 + $0x20] sm:$0xff] (!%p897_p0)   ;;  %v1089_v3 = vld [vmem:[#allocation8 + $0x70] sm:$0xff] (!%p897_p0)   ;;  %v1091_v5 = vld [vmem:[#allocation8 + $0x78] sm:$0xff] (!%p897_p0)  }
  0x8a   : > { %v1090_v4 = vld [vmem:[#allocation8 + $0x30] sm:$0xff] (!%p897_p0)   ;;  %v1092_v6 = vld [vmem:[#allocation8 + $0x38] sm:$0xff] (!%p897_p0)   ;;  %v898_v10 = vld [vmem:[%s1565_s4] ss:$0 sm:$0xff] (!%p897_p0) }
  0x8b   : > { %526 = vmatpush1.bf16.msra.mxu0 %v1043_v11 }
  0x8c   : > { %527 = vmatprep.subr.bf16.mxu0 %v1044_v12 }
  0x8f   : > { %528 = vmatpush1.bf16.msra.mxu0 %v1046_v13 }
  0x90   : > { %529 = vmatprep.subr.bf16.mxu0 %v1047_v14 }
  0x93   : > { %530 = vmatpush1.bf16.msra.mxu0 %v1049_v17 }
  0x94   : > { %531 = vmatprep.subr.bf16.mxu0 %v1050_v18 }
  0x97   : > { %532 = vmatpush1.bf16.msra.mxu0 %v1052_v19 }
  0x98   : > { %533 = vmatprep.subr.bf16.mxu0 %v1053_v20 }
  0x9b   : > { %534 = vmatpush1.bf16.msra.mxu0 %v1055_v21 }
  0x9c   : > { %535 = vmatprep.subr.bf16.mxu0 %v1056_v22 }
  0x9f   : > { %536 = vmatpush1.bf16.msra.mxu0 %v1058_v23 }
  0xa0   : > { %537 = vmatprep.subr.bf16.mxu0 %v1059_v24 }
  0xa3   : > { %538 = vmatpush1.bf16.msra.mxu0 %v1061_v25 }
  0xa4   : > { %539 = vmatprep.subr.bf16.mxu0 %v1062_v26 }
  0xa7   : > { %540 = vmatpush1.bf16.msra.mxu0 %v1064_v27 }
  0xa8   : > { %541 = vmatprep.subr.bf16.mxu0 %v1065_v28 }
  0xab   : > { %542 = vmatpush1.bf16.msra.mxu0 %v1067_v29 }
  0xac   : > { %543 = vmatprep.subr.bf16.mxu0 %v1068_v30 }
  0xaf   : > { %544 = vmatpush1.bf16.msra.mxu0 %v1070_v31 }
  0xb0   : > { %545 = vmatprep.subr.bf16.mxu0 %v1071_v32 }
  0xb3   : > { %546 = vmatpush1.bf16.msra.mxu0 %v1073_v33 }
  0xb4   : > { %547 = vmatprep.subr.bf16.mxu0 %v1074_v34 }
  0xb7   : > { %548 = vmatpush1.bf16.msra.mxu0 %v1076_v35 }
  0xb8   : > { %920 = vmatprep.subr.bf16.mxu0 (!%p897_p0), %v1077_v53 }
  0xba   : > { %550 = vmatmul.mubr.bf16.vlgmr.msra.gmra.mrb[0].mxu0 %v311_v37 }
  0xbb   : > { %921 = vmatpush3.bf16.msra.mxu0 (!%p897_p0), %v1078_v54 }
  0xbc   : > { %922 = vmatprep.subr.bf16.mxu0 (!%p897_p0), %v1079_v55 }
  0xbf   : > { %923 = vmatpush3.bf16.msra.mxu0 (!%p897_p0), %v1080_v56 }
  0xc0   : > { %924 = vmatprep.subr.bf16.mxu0 (!%p897_p0), %v1081_v57 }
  0xc3   : > { %925 = vmatpush3.bf16.msra.mxu0 (!%p897_p0), %v1082_v58 }
  0xc4   : > { %926 = vmatprep.subr.bf16.mxu0 (!%p897_p0), %v1083_v59 }
  0xc7   : > { %927 = vmatpush3.bf16.msra.mxu0 (!%p897_p0), %v1084_v60 }
  0xc8   : > { %928 = vmatprep.subr.bf16.mxu0 (!%p897_p0), %v1085_v61 }
  0xcb   : > { %929 = vmatpush3.bf16.msra.mxu0 (!%p897_p0), %v1086_v62 }
  0xcc   : > { %930 = vmatprep.subr.bf16.mxu0 (!%p897_p0), %v1087_v63 }
  0xcf   : > { %931 = vmatpush3.bf16.msra.mxu0 (!%p897_p0), %v1088_v2 }
  0xd0   : > { %932 = vmatprep.subr.bf16.mxu0 (!%p897_p0), %v1089_v3 }
  0xd3   : > { %933 = vmatpush3.bf16.msra.mxu0 (!%p897_p0), %v1090_v4 }
  0xd4   : > { %934 = vmatprep.subr.bf16.mxu0 (!%p897_p0), %v1091_v5 }
  0xd7   : > { %935 = vmatpush3.bf16.msra.mxu0 (!%p897_p0), %v1092_v6 }
 0x18d   : > { %v551_v45 = vpop.f32.mrb[0].mxu0  ;;  %565 = sbr.rel (%p897_p0) target bundleno = 632 (0x278), region = 60 }
 0x18e   : > { %v552_v46 = vadd.f32 %v551_v45, %v350_v43  ;;  %v553_v47 = vpop.f32.mrb[1].mxu0 }
 0x18f   : > { %v554_v48 = vadd.f32 %v553_v47, %v354_v44  ;;  %v555_v49 = vpop.f32.mrb[2].mxu0 }
 0x190   : > { %v558_v50 = vmax.f32 %v552_v46, 0.0  ;;  %v556_v51 = vpop.f32.mrb[3].mxu0 }
 0x191   : > { %v559_v52 = vmax.f32 %v554_v48, 0.0 }
 0x192   : > { %560 = vst [vmem:[#allocation2] sm:$0xff] %v558_v50 }
 0x193   : > { %561 = vst [vmem:[#allocation2 + $0x8] sm:$0xff] %v559_v52 }
 0x199   : > { %v566_v7 = vld [vmem:[#allocation2] sm:$0xff] }
 0x19a   : > { %v567_v0 = vld [vmem:[#allocation2 + $0x8] sm:$0xff]  ;;  %v568_v8 = vpack.c.bf16 %v566_v7, %v566_v7 }
 0x19b   : > { %v569_v1 = vpack.c.bf16 %v567_v0, %v567_v0 }
 0x19d   : > { %737 = vmatprep.mubr.bf16.mxu0 %v569_v1 }
 0x19e   : > { %738 = vmatmul.mubr.bf16.vlgmr.msra.gmra.mrb[0].mxu0 %v568_v8 }
 0x271   : > { %v936_v9 = vpop.f32.mrb[0].mxu0 }
 0x272   : > { %v937_v11 = vpop.f32.mrb[1].mxu0 }
 0x273   : > { %v938_v12 = vadd.f32 %v937_v11, %v936_v9  ;;  %v939_v13 = vpop.f32.mrb[2].mxu0 }
 0x274   : > { %v940_v14 = vpop.f32.mrb[3].mxu0 }
 0x275   : > { %v740_v15 = vadd.f32 %v938_v12, %v898_v10 }
 0x277   : > { %745 = vst [vmem:[#allocation9] sm:$0xff] %v740_v15 }
 0x278 PF: > { %p972_p3 = scmp.eq.s32.totalorder %s1336_s24, 1  ;;  %s1276_s16 = smov [#allocation9]  }
 0x279   : > { %s755_s17 = sshll.u32 %s1276_s16, 4  ;;  %s756_s17 = int_to_ptr.vmem [resolvable:$true] %s755_s17 }
 0x27a   : > { %s1179_s8 = scalar_lea.vmem %s756_s17, 128  ;;  %p1186_p2 = scmp.lt.s32.totalorder %s756_s17, %s756_s17 }
 0x27b   : > { %p1180_p10 = scmp.ne.s32.totalorder %s756_s17, %s1179_s8  ;;  %p1187_p8 = scmp.lt.s32.totalorder %s1179_s8, %s1179_s8 }
 0x27d   : > { %p1181_p12 = pnand %p1180_p10, %p972_p3  ;;  %p1188_p13 = por %p1187_p8, %p1186_p2 }
 0x27f   : > { %p1182_p1 = pneg %p1181_p12 }
 0x281   : > { %p1189_p4 = pnand %p1188_p13, %p1182_p1 }
 0x283   : > { %1192 = shalt.err (!%p1189_p4)
}
 0x284   : > { %s1193_s13 = scalar_lea.hbm %s1566_s5, 128 }
 0x285   : > { %p1194_p5 = scmp.ne.s32.totalorder %s1566_s5, %s1193_s13  ;;  %p1199_p9 = scmp.lt.u32.totalorder %s1193_s13, %s1566_s5 }
 0x287   : > { %p1195_p7 = pnand %p1194_p5, %p972_p3 }
 0x289   : > { %p1196_p6 = pneg %p1195_p7 }
 0x28b   : > { %p1201_p11 = pnand %p1199_p9, %p1196_p6 }
 0x28d   : > { %1204 = shalt.err (!%p1201_p11)
}
 0x28e   : > { %953 = dma.vmem_to_hbm [thread:$0]  (%p972_p3), %s756_s17, 128, %s1566_s5, [#allocation5]  }
 0x28f   : > { %1242 = dma.done.wait (%p972_p3), [#allocation5], 128  }
 0x290   : > { %1244 = vsyncadd (%p972_p3), [#allocation5], 4294967168 }
 0x291 PF: > { %s20_s23 = sadd.s32 1, %s1267_s23   ;;  %s1582_s18 = smov %s1251_s19 }
 0x292   : > { %p17_p0 = scmp.ge.s32.totalorder %s20_s23, 4   ;;  %s1583_s19 = smov %s1255_s20 }
 0x293   : > { %s1584_s20 = smov %s1425_s12  ;;  %s1585_s21 = smov %s1263_s22 }
 0x294   : > { %s1586_s22 = smov %s1588_s15  ;;  %19 = sbr.rel (!%p17_p0) target bundleno = 6 (0x6), region = 99 }
 0x29b   :  { %768 = vsyncpa [#allocation4], 1 }
 0x29c   :  { %770 = vsyncpa [#allocation4 + $0x1], 1 }
 0x29d   :  { %771 = vsyncpa [#allocation7], 1 }
 0x29e   :  { %773 = vsyncpa [#allocation7 + $0x1], 1 }
 0x29f   :  { %774 = vsyncpa [#allocation5], 1 }
 0x2a0   :  { %776 = vsyncpa [#allocation5 + $0x1], 1 }

</bundles_post_ra>
